<compile_context>
chip_gen: v7x
topology: tpu7x:2x2x1
jax: 0.10.0
libtpu: 0.0.40
codegen_flags: <defaults>
</compile_context>

<pallas_src>
import functools

import numpy as np
import jax
import jax.numpy as jnp
from jax import lax
from jax.experimental import pallas as pl
from jax.experimental.pallas import tpu as pltpu

IN_F = 9            # per-joint input features
H1, H2 = 16, 32     # hidden widths
OUT_F = 6           # raw MLP output (6D rotation rep / translation)
OUT_W = 9           # final per-joint output width (3x3 matrix or trans+zeros)
LN_EPS = 1e-5       # nn.LayerNorm default eps
NORM_EPS_SQ = 1e-24  # (F.normalize eps = 1e-12)^2, guard on the squared norm
NEG_SLOPE = 0.1     # LeakyReLU negative_slope
_VEC_COLS = 8       # lane width of the packed vector slab


def _cdiv(a, b):
    return (a + b - 1) // b


def _round_up(a, b):
    return _cdiv(a, b) * b


def _leaky_relu(x):
    # for x < 0, 0.1*x > x, so a single max covers both branches
    return jnp.maximum(x, NEG_SLOPE * x)


def _layer_norm_fm(h, gamma, beta):
    """Feature-major LayerNorm: h is (features, rows); reduce the short sublane axis."""
    mu = jnp.mean(h, axis=0, keepdims=True)
    hc = h - mu
    var = jnp.mean(hc * hc, axis=0, keepdims=True)
    return hc * lax.rsqrt(var + LN_EPS) * gamma + beta


def rtnet_kernel(x_ref, w1t_ref, w2t_ref, w3t_ref, vec_ref, o_ref, *, num_joints):
    tn = o_ref.shape[1]                       # rows handled by this tile (lane axis)

    # Input block in its native HBM layout (rows, 9); upcast after load.
    x = x_ref[...].astype(jnp.float32)        # (tn, 9)

    w1t = w1t_ref[...]                        # (16, 9)
    w2t = w2t_ref[...]                        # (32, 16)
    w3t = w3t_ref[...]                        # (6, 32)
    vec = vec_ref[...]                        # (32, 8) packed parameter columns
    bias1, gam1, bet1 = vec[0:H1, 0:1], vec[0:H1, 1:2], vec[0:H1, 2:3]
    bias2, gam2, bet2 = vec[0:H2, 3:4], vec[0:H2, 4:5], vec[0:H2, 5:6]
    bias3 = vec[0:OUT_F, 6:7]

    # ---- per-joint MLP, feature-major (features on sublanes, rows on lanes) ----
    # Layer 1 contracts the lane dims of both operands, so the MXU does the
    # (rows, feat) -> (feat, rows) transpose implicitly.
    h = lax.dot_general(w1t, x, (((1,), (1,)), ((), ())),
                        preferred_element_type=jnp.float32) + bias1   # (16, tn)
    h = _leaky_relu(_layer_norm_fm(h, gam1, bet1))
    h = jnp.dot(w2t, h, preferred_element_type=jnp.float32) + bias2   # (32, tn)
    h = _leaky_relu(_layer_norm_fm(h, gam2, bet2))
    y = jnp.dot(w3t, h, preferred_element_type=jnp.float32) + bias3   # (6, tn)

    # ---- rotation_6d_to_matrix (Gram-Schmidt): elementwise on (1, tn) rows ----
    y0, y1, y2 = y[0:1, :], y[1:2, :], y[2:3, :]
    y3, y4, y5 = y[3:4, :], y[4:5, :], y[5:6, :]

    inv1 = lax.rsqrt(jnp.maximum(y0 * y0 + y1 * y1 + y2 * y2, NORM_EPS_SQ))
    b1x, b1y, b1z = y0 * inv1, y1 * inv1, y2 * inv1
    d = b1x * y3 + b1y * y4 + b1z * y5
    u2x, u2y, u2z = y3 - d * b1x, y4 - d * b1y, y5 - d * b1z
    inv2 = lax.rsqrt(jnp.maximum(u2x * u2x + u2y * u2y + u2z * u2z, NORM_EPS_SQ))
    b2x, b2y, b2z = u2x * inv2, u2y * inv2, u2z * inv2
    b3x = b1y * b2z - b1z * b2y
    b3y = b1z * b2x - b1x * b2z
    b3z = b1x * b2y - b1y * b2x

    # ---- joint-0 predicate from the global row index (row-major flatten: j = row % J).
    # Exact float-divide trick (valid for row < 2**23): avoids vector int div/mod.
    col = pl.program_id(0) * tn + lax.broadcasted_iota(jnp.int32, (1, tn), 1)
    colf = col.astype(jnp.float32)
    jf = jnp.float32(num_joints)
    quot = jnp.floor(colf / jf + jnp.float32(0.5))
    is_j0 = jnp.abs(colf - quot * jf) < jnp.float32(0.5)              # (1, tn) bool

    zero = jnp.zeros_like(y0)
    rows = [
        jnp.where(is_j0, y0, b1x),
        jnp.where(is_j0, y1, b1y),
        jnp.where(is_j0, y2, b1z),
        jnp.where(is_j0, y3, b2x),
        jnp.where(is_j0, y4, b2y),
        jnp.where(is_j0, y5, b2z),
        jnp.where(is_j0, zero, b3x),
        jnp.where(is_j0, zero, b3y),
        jnp.where(is_j0, zero, b3z),
    ]
    o_ref[...] = jnp.concatenate(rows, axis=0)                        # (9, tn), lane-dense


def _pick_tile(n_rows, tile_n):
    tile_target = _round_up(max(128, int(tile_n)), 128)
    # Prefer >= 4 grid steps when there is enough work (>= 2 per TensorCore on v7x).
    if n_rows >= 2048:
        tile_target = min(tile_target, _round_up(_cdiv(n_rows, 4), 128))
    if n_rows <= tile_target:
        return n_rows, 1          # single exact-fit block: no padding, no ragged edge
    return tile_target, _cdiv(n_rows, tile_target)


@functools.partial(jax.jit, static_argnames=("tile_n",))
def rotation_translation_forward(x, params, *, tile_n=4096):
    """x: (B, S, J, 9) -> (B, S, J, 9) float32 via the Pallas kernel."""
    B, S, J, F = x.shape
    assert F == IN_F
    w1, b1, g1, be1, w2, b2, g2, be2, w3, b3 = params

    N = B * S * J
    assert N < (1 << 23), "in-kernel joint-id trick requires fewer than 2**23 rows"
    x2 = x.reshape(N, IN_F)                       # native dtype; upcast inside kernel

    # Pre-transposed weights (feature-major) + one packed slab for the 7 vectors.
    w1t = jnp.asarray(w1, jnp.float32).T          # (16, 9)
    w2t = jnp.asarray(w2, jnp.float32).T          # (32, 16)
    w3t = jnp.asarray(w3, jnp.float32).T          # (6, 32)

    def col(v, width):
        c = jnp.zeros((H2,), jnp.float32)
        return c.at[:width].set(jnp.asarray(v, jnp.float32).reshape(-1))

    vec = jnp.stack(
        [col(b1, H1), col(g1, H1), col(be1, H1),
         col(b2, H2), col(g2, H2), col(be2, H2),
         col(b3, OUT_F), jnp.zeros((H2,), jnp.float32)], axis=1)      # (32, 8)

    tile, num_tiles = _pick_tile(N, tile_n)
    n_out = num_tiles * tile

    def const_spec(shape):
        return pl.BlockSpec(shape, lambda i: (0,) * len(shape))

    y = pl.pallas_call(
        functools.partial(rtnet_kernel, num_joints=J),
        out_shape=jax.ShapeDtypeStruct((OUT_W, n_out), jnp.float32),
        grid=(num_tiles,),
        in_specs=[
            pl.BlockSpec((tile, IN_F), lambda i: (i, 0)),  # ragged edge handled by Pallas
            const_spec((H1, IN_F)),
            const_spec((H2, H1)),
            const_spec((OUT_F, H2)),
            const_spec((H2, _VEC_COLS)),
        ],
        out_specs=pl.BlockSpec((OUT_W, tile), lambda i: (0, i)),
        compiler_params=pltpu.CompilerParams(
            dimension_semantics=("parallel",),
            vmem_limit_bytes=32 * 1024 * 1024),
    )(x2, w1t, w2t, w3t, vec)

    # Lane-dense (9, n_out) kernel output -> (B, S, J, 9): pure layout plumbing.
    return y[:, :N].T.reshape(B, S, J, OUT_W)


def init_params(key):
    """Deterministic init matching RotationTranslationNet.__init__ (weights
    stored as (fan_in, fan_out))."""
    k1, k2, k3, k4, k5 = jax.random.split(key, 5)

    def lin_init(kw, kb, fan_in, fan_out):
        bound = 1.0 / np.sqrt(fan_in)
        w = jax.random.uniform(kw, (fan_in, fan_out), jnp.float32, -bound, bound)
        b = jax.random.uniform(kb, (1, fan_out), jnp.float32, -bound, bound)
        return w, b

    w1, b1 = lin_init(k1, k2, IN_F, H1)
    w2, b2 = lin_init(k3, k4, H1, H2)
    w3 = 0.0001 * jax.random.normal(k5, (H2, OUT_F), jnp.float32)  # std = 1e-4
    b3 = jnp.full((1, OUT_F), 0.0001, jnp.float32)                 # const 1e-4
    g1 = jnp.ones((1, H1), jnp.float32)
    be1 = jnp.zeros((1, H1), jnp.float32)
    g2 = jnp.ones((1, H2), jnp.float32)
    be2 = jnp.zeros((1, H2), jnp.float32)
    return (w1, b1, g1, be1, w2, b2, g2, be2, w3, b3)


def _layer_norm_ref(h, gamma, beta):
    mu = jnp.mean(h, axis=-1, keepdims=True)
    hc = h - mu
    var = jnp.mean(hc * hc, axis=-1, keepdims=True)
    return hc * lax.rsqrt(var + LN_EPS) * gamma + beta


def reference_forward(x, params):
    """Pure-JAX replica of the PyTorch forward (incl. rotation_6d_to_matrix)."""
    w1, b1, g1, be1, w2, b2, g2, be2, w3, b3 = params
    B, S, J, _ = x.shape
    hp = lax.Precision.HIGHEST
    h = jnp.dot(x.astype(jnp.float32), w1, precision=hp) + b1[0]
    h = _leaky_relu(_layer_norm_ref(h, g1[0], be1[0]))
    h = jnp.dot(h, w2, precision=hp) + b2[0]
    h = _leaky_relu(_layer_norm_ref(h, g2[0], be2[0]))
    y = jnp.dot(h, w3, precision=hp) + b3[0]                        # (B, S, J, 6)

    trans = y[:, :, 0, :]                                           # (B, S, 6)
    d6 = y[:, :, 1:, :]                                             # (B, S, J-1, 6)
    a1, a2 = d6[..., :3], d6[..., 3:]
    b1v = a1 * lax.rsqrt(jnp.maximum(jnp.sum(a1 * a1, -1, keepdims=True),
                                     NORM_EPS_SQ))
    dot = jnp.sum(b1v * a2, -1, keepdims=True)
    u2 = a2 - dot * b1v
    b2v = u2 * lax.rsqrt(jnp.maximum(jnp.sum(u2 * u2, -1, keepdims=True),
                                     NORM_EPS_SQ))
    b3v = jnp.cross(b1v, b2v)
    rot = jnp.concatenate([b1v, b2v, b3v], axis=-1)                 # (B, S, J-1, 9)
    tpad = jnp.concatenate(
        [trans[:, :, None, :], jnp.zeros((B, S, 1, 3), jnp.float32)], axis=-1)
    return jnp.concatenate([tpad, rot], axis=2)                     # (B, S, J, 9)


if __name__ == "__main__":
    key = jax.random.PRNGKey(0)
    kp, kx1, kx2 = jax.random.split(key, 3)
    params = init_params(kp)

    # small but representative shapes: batch=2, seq=8, joints=4, features=9
    B, S, J = 2, 8, 4
    x = jax.random.normal(kx1, (B, S, J, IN_F), jnp.float32)
    out = jax.block_until_ready(rotation_translation_forward(x, params))
    ref = jax.block_until_ready(reference_forward(x, params))
    assert out.shape == (B, S, J, OUT_W), out.shape
    np.testing.assert_allclose(np.asarray(out), np.asarray(ref),
                               rtol=1e-4, atol=5e-5)

    # Multi-tile / ragged-edge path (review correctness concern): N = 200 rows with
    # tile_n=128 -> 2 grid steps, partially out-of-bounds last input block.
    B2, S2, J2 = 1, 40, 5
    x_r = jax.random.normal(kx2, (B2, S2, J2, IN_F), jnp.float32)
    out_r = jax.block_until_ready(
        rotation_translation_forward(x_r, params, tile_n=128))
    ref_r = jax.block_until_ready(reference_forward(x_r, params))
    np.testing.assert_allclose(np.asarray(out_r), np.asarray(ref_r),
                               rtol=1e-4, atol=5e-5)

    print("KERNEL_OK")
</pallas_src>

<mosaic_0001>
module attributes {stable_mosaic.version = 11 : i64} {
  func.func @rtnet_kernel(%arg0: i32, %arg1: memref<64x9xf32, #tpu.memory_space<vmem>>, %arg2: memref<16x9xf32, #tpu.memory_space<vmem>>, %arg3: memref<32x16xf32, #tpu.memory_space<vmem>>, %arg4: memref<6x32xf32, #tpu.memory_space<vmem>>, %arg5: memref<32x8xf32, #tpu.memory_space<vmem>>, %arg6: memref<9x64xf32, #tpu.memory_space<vmem>>) attributes {dimension_semantics = [#tpu.dimension_semantics<parallel>], iteration_bounds = array<i64: 1>, scalar_prefetch = 0 : i64, scratch_operands = 0 : i64, tpu.core_type = #tpu.core_type<tc>, window_params = [{transform_indices = @transform_0, window_bounds = array<i64: 64, 9>}, {pipeline_mode = #tpu.pipeline_mode<synchronous>, transform_indices = @transform_1, window_bounds = array<i64: 16, 9>}, {pipeline_mode = #tpu.pipeline_mode<synchronous>, transform_indices = @transform_2, window_bounds = array<i64: 32, 16>}, {pipeline_mode = #tpu.pipeline_mode<synchronous>, transform_indices = @transform_3, window_bounds = array<i64: 6, 32>}, {pipeline_mode = #tpu.pipeline_mode<synchronous>, transform_indices = @transform_4, window_bounds = array<i64: 32, 8>}, {transform_indices = @transform_5, window_bounds = array<i64: 9, 64>}]} {
    %c0 = arith.constant 0 : index
    %c0_0 = arith.constant 0 : index
    %0 = vector.load %arg1[%c0, %c0_0] : memref<64x9xf32, #tpu.memory_space<vmem>>, vector<64x9xf32>
    %c0_1 = arith.constant 0 : index
    %c0_2 = arith.constant 0 : index
    %1 = vector.load %arg2[%c0_1, %c0_2] : memref<16x9xf32, #tpu.memory_space<vmem>>, vector<16x9xf32>
    %c0_3 = arith.constant 0 : index
    %c0_4 = arith.constant 0 : index
    %2 = vector.load %arg3[%c0_3, %c0_4] : memref<32x16xf32, #tpu.memory_space<vmem>>, vector<32x16xf32>
    %c0_5 = arith.constant 0 : index
    %c0_6 = arith.constant 0 : index
    %3 = vector.load %arg4[%c0_5, %c0_6] : memref<6x32xf32, #tpu.memory_space<vmem>>, vector<6x32xf32>
    %c0_7 = arith.constant 0 : index
    %c0_8 = arith.constant 0 : index
    %4 = vector.load %arg5[%c0_7, %c0_8] : memref<32x8xf32, #tpu.memory_space<vmem>>, vector<32x8xf32>
    %5 = vector.extract_strided_slice %4 {offsets = [0, 0], sizes = [16, 1], strides = [1, 1]} : vector<32x8xf32> to vector<16x1xf32>
    %6 = vector.extract_strided_slice %4 {offsets = [0, 1], sizes = [16, 1], strides = [1, 1]} : vector<32x8xf32> to vector<16x1xf32>
    %7 = vector.extract_strided_slice %4 {offsets = [0, 2], sizes = [16, 1], strides = [1, 1]} : vector<32x8xf32> to vector<16x1xf32>
    %8 = vector.extract_strided_slice %4 {offsets = [0, 3], sizes = [32, 1], strides = [1, 1]} : vector<32x8xf32> to vector<32x1xf32>
    %9 = vector.extract_strided_slice %4 {offsets = [0, 4], sizes = [32, 1], strides = [1, 1]} : vector<32x8xf32> to vector<32x1xf32>
    %10 = vector.extract_strided_slice %4 {offsets = [0, 5], sizes = [32, 1], strides = [1, 1]} : vector<32x8xf32> to vector<32x1xf32>
    %11 = vector.extract_strided_slice %4 {offsets = [0, 6], sizes = [6, 1], strides = [1, 1]} : vector<32x8xf32> to vector<6x1xf32>
    %cst = arith.constant dense<0.000000e+00> : vector<16x64xf32>
    %12 = tpu.matmul %1, %0, %cst {dimension_numbers = #tpu.dot_dimension_numbers<[1], [1], [0], [0], [0, 0, 1, 0], [], []>} : vector<16x9xf32>, vector<64x9xf32>, vector<16x64xf32> -> vector<16x64xf32>
    %13 = vector.broadcast %5 : vector<16x1xf32> to vector<16x64xf32>
    %14 = arith.addf %12, %13 : vector<16x64xf32>
    %cst_9 = arith.constant dense<0.000000e+00> : vector<64xf32>
    %15 = vector.multi_reduction <add>, %14, %cst_9 [0] : vector<16x64xf32> to vector<64xf32>
    %16 = vector.shape_cast %15 : vector<64xf32> to vector<1x64xf32>
    %cst_10 = arith.constant 1.600000e+01 : f32
    %17 = vector.broadcast %cst_10 : f32 to vector<1x64xf32>
    %18 = arith.divf %16, %17 : vector<1x64xf32>
    %19 = vector.broadcast %18 : vector<1x64xf32> to vector<16x64xf32>
    %20 = arith.subf %14, %19 : vector<16x64xf32>
    %21 = arith.mulf %20, %20 : vector<16x64xf32>
    %cst_11 = arith.constant dense<0.000000e+00> : vector<64xf32>
    %22 = vector.multi_reduction <add>, %21, %cst_11 [0] : vector<16x64xf32> to vector<64xf32>
    %23 = vector.shape_cast %22 : vector<64xf32> to vector<1x64xf32>
    %cst_12 = arith.constant 1.600000e+01 : f32
    %24 = vector.broadcast %cst_12 : f32 to vector<1x64xf32>
    %25 = arith.divf %23, %24 : vector<1x64xf32>
    %cst_13 = arith.constant 9.99999974E-6 : f32
    %26 = vector.broadcast %cst_13 : f32 to vector<1x64xf32>
    %27 = arith.addf %25, %26 : vector<1x64xf32>
    %28 = math.rsqrt %27 : vector<1x64xf32>
    %29 = vector.broadcast %28 : vector<1x64xf32> to vector<16x64xf32>
    %30 = arith.mulf %20, %29 : vector<16x64xf32>
    %31 = vector.broadcast %6 : vector<16x1xf32> to vector<16x64xf32>
    %32 = arith.mulf %30, %31 : vector<16x64xf32>
    %33 = vector.broadcast %7 : vector<16x1xf32> to vector<16x64xf32>
    %34 = arith.addf %32, %33 : vector<16x64xf32>
    %cst_14 = arith.constant 1.000000e-01 : f32
    %35 = vector.broadcast %cst_14 : f32 to vector<16x64xf32>
    %36 = arith.mulf %35, %34 : vector<16x64xf32>
    %37 = arith.maximumf %34, %36 : vector<16x64xf32>
    %cst_15 = arith.constant dense<0.000000e+00> : vector<32x64xf32>
    %38 = tpu.matmul %2, %37, %cst_15 {dimension_numbers = #tpu.dot_dimension_numbers<[1], [0], [0], [1], [0, 0, 1, 1], [], []>} : vector<32x16xf32>, vector<16x64xf32>, vector<32x64xf32> -> vector<32x64xf32>
    %39 = vector.broadcast %8 : vector<32x1xf32> to vector<32x64xf32>
    %40 = arith.addf %38, %39 : vector<32x64xf32>
    %cst_16 = arith.constant dense<0.000000e+00> : vector<64xf32>
    %41 = vector.multi_reduction <add>, %40, %cst_16 [0] : vector<32x64xf32> to vector<64xf32>
    %42 = vector.shape_cast %41 : vector<64xf32> to vector<1x64xf32>
    %cst_17 = arith.constant 3.200000e+01 : f32
    %43 = vector.broadcast %cst_17 : f32 to vector<1x64xf32>
    %44 = arith.divf %42, %43 : vector<1x64xf32>
    %45 = vector.broadcast %44 : vector<1x64xf32> to vector<32x64xf32>
    %46 = arith.subf %40, %45 : vector<32x64xf32>
    %47 = arith.mulf %46, %46 : vector<32x64xf32>
    %cst_18 = arith.constant dense<0.000000e+00> : vector<64xf32>
    %48 = vector.multi_reduction <add>, %47, %cst_18 [0] : vector<32x64xf32> to vector<64xf32>
    %49 = vector.shape_cast %48 : vector<64xf32> to vector<1x64xf32>
    %cst_19 = arith.constant 3.200000e+01 : f32
    %50 = vector.broadcast %cst_19 : f32 to vector<1x64xf32>
    %51 = arith.divf %49, %50 : vector<1x64xf32>
    %cst_20 = arith.constant 9.99999974E-6 : f32
    %52 = vector.broadcast %cst_20 : f32 to vector<1x64xf32>
    %53 = arith.addf %51, %52 : vector<1x64xf32>
    %54 = math.rsqrt %53 : vector<1x64xf32>
    %55 = vector.broadcast %54 : vector<1x64xf32> to vector<32x64xf32>
    %56 = arith.mulf %46, %55 : vector<32x64xf32>
    %57 = vector.broadcast %9 : vector<32x1xf32> to vector<32x64xf32>
    %58 = arith.mulf %56, %57 : vector<32x64xf32>
    %59 = vector.broadcast %10 : vector<32x1xf32> to vector<32x64xf32>
    %60 = arith.addf %58, %59 : vector<32x64xf32>
    %cst_21 = arith.constant 1.000000e-01 : f32
    %61 = vector.broadcast %cst_21 : f32 to vector<32x64xf32>
    %62 = arith.mulf %61, %60 : vector<32x64xf32>
    %63 = arith.maximumf %60, %62 : vector<32x64xf32>
    %cst_22 = arith.constant dense<0.000000e+00> : vector<6x64xf32>
    %64 = tpu.matmul %3, %63, %cst_22 {dimension_numbers = #tpu.dot_dimension_numbers<[1], [0], [0], [1], [0, 0, 1, 1], [], []>} : vector<6x32xf32>, vector<32x64xf32>, vector<6x64xf32> -> vector<6x64xf32>
    %65 = vector.broadcast %11 : vector<6x1xf32> to vector<6x64xf32>
    %66 = arith.addf %64, %65 : vector<6x64xf32>
    %67 = vector.extract_strided_slice %66 {offsets = [0, 0], sizes = [1, 64], strides = [1, 1]} : vector<6x64xf32> to vector<1x64xf32>
    %68 = vector.extract_strided_slice %66 {offsets = [1, 0], sizes = [1, 64], strides = [1, 1]} : vector<6x64xf32> to vector<1x64xf32>
    %69 = vector.extract_strided_slice %66 {offsets = [2, 0], sizes = [1, 64], strides = [1, 1]} : vector<6x64xf32> to vector<1x64xf32>
    %70 = vector.extract_strided_slice %66 {offsets = [3, 0], sizes = [1, 64], strides = [1, 1]} : vector<6x64xf32> to vector<1x64xf32>
    %71 = vector.extract_strided_slice %66 {offsets = [4, 0], sizes = [1, 64], strides = [1, 1]} : vector<6x64xf32> to vector<1x64xf32>
    %72 = vector.extract_strided_slice %66 {offsets = [5, 0], sizes = [1, 64], strides = [1, 1]} : vector<6x64xf32> to vector<1x64xf32>
    %73 = arith.mulf %67, %67 : vector<1x64xf32>
    %74 = arith.mulf %68, %68 : vector<1x64xf32>
    %75 = arith.addf %73, %74 : vector<1x64xf32>
    %76 = arith.mulf %69, %69 : vector<1x64xf32>
    %77 = arith.addf %75, %76 : vector<1x64xf32>
    %cst_23 = arith.constant 1.000000e-24 : f32
    %78 = vector.broadcast %cst_23 : f32 to vector<1x64xf32>
    %79 = arith.maximumf %77, %78 : vector<1x64xf32>
    %80 = math.rsqrt %79 : vector<1x64xf32>
    %81 = arith.mulf %67, %80 : vector<1x64xf32>
    %82 = arith.mulf %68, %80 : vector<1x64xf32>
    %83 = arith.mulf %69, %80 : vector<1x64xf32>
    %84 = arith.mulf %81, %70 : vector<1x64xf32>
    %85 = arith.mulf %82, %71 : vector<1x64xf32>
    %86 = arith.addf %84, %85 : vector<1x64xf32>
    %87 = arith.mulf %83, %72 : vector<1x64xf32>
    %88 = arith.addf %86, %87 : vector<1x64xf32>
    %89 = arith.mulf %88, %81 : vector<1x64xf32>
    %90 = arith.subf %70, %89 : vector<1x64xf32>
    %91 = arith.mulf %88, %82 : vector<1x64xf32>
    %92 = arith.subf %71, %91 : vector<1x64xf32>
    %93 = arith.mulf %88, %83 : vector<1x64xf32>
    %94 = arith.subf %72, %93 : vector<1x64xf32>
    %95 = arith.mulf %90, %90 : vector<1x64xf32>
    %96 = arith.mulf %92, %92 : vector<1x64xf32>
    %97 = arith.addf %95, %96 : vector<1x64xf32>
    %98 = arith.mulf %94, %94 : vector<1x64xf32>
    %99 = arith.addf %97, %98 : vector<1x64xf32>
    %cst_24 = arith.constant 1.000000e-24 : f32
    %100 = vector.broadcast %cst_24 : f32 to vector<1x64xf32>
    %101 = arith.maximumf %99, %100 : vector<1x64xf32>
    %102 = math.rsqrt %101 : vector<1x64xf32>
    %103 = arith.mulf %90, %102 : vector<1x64xf32>
    %104 = arith.mulf %92, %102 : vector<1x64xf32>
    %105 = arith.mulf %94, %102 : vector<1x64xf32>
    %106 = arith.mulf %82, %105 : vector<1x64xf32>
    %107 = arith.mulf %83, %104 : vector<1x64xf32>
    %108 = arith.subf %106, %107 : vector<1x64xf32>
    %109 = arith.mulf %83, %103 : vector<1x64xf32>
    %110 = arith.mulf %81, %105 : vector<1x64xf32>
    %111 = arith.subf %109, %110 : vector<1x64xf32>
    %112 = arith.mulf %81, %104 : vector<1x64xf32>
    %113 = arith.mulf %82, %103 : vector<1x64xf32>
    %114 = arith.subf %112, %113 : vector<1x64xf32>
    %c64_i32 = arith.constant 64 : i32
    %115 = arith.muli %arg0, %c64_i32 : i32
    %116 = tpu.iota {dimensions = array<i32: 1>} : vector<1x64xi32>
    %117 = vector.broadcast %115 : i32 to vector<1x64xi32>
    %118 = arith.addi %117, %116 : vector<1x64xi32>
    %119 = arith.sitofp %118 : vector<1x64xi32> to vector<1x64xf32>
    %cst_25 = arith.constant 4.000000e+00 : f32
    %120 = vector.broadcast %cst_25 : f32 to vector<1x64xf32>
    %121 = arith.divf %119, %120 : vector<1x64xf32>
    %cst_26 = arith.constant 5.000000e-01 : f32
    %122 = vector.broadcast %cst_26 : f32 to vector<1x64xf32>
    %123 = arith.addf %121, %122 : vector<1x64xf32>
    %124 = math.floor %123 : vector<1x64xf32>
    %cst_27 = arith.constant 4.000000e+00 : f32
    %125 = vector.broadcast %cst_27 : f32 to vector<1x64xf32>
    %126 = arith.mulf %124, %125 : vector<1x64xf32>
    %127 = arith.subf %119, %126 : vector<1x64xf32>
    %128 = math.absf %127 : vector<1x64xf32>
    %cst_28 = arith.constant 5.000000e-01 : f32
    %129 = vector.broadcast %cst_28 : f32 to vector<1x64xf32>
    %130 = arith.cmpf olt, %128, %129 : vector<1x64xf32>
    %cst_29 = arith.constant 0.000000e+00 : f32
    %131 = vector.broadcast %cst_29 : f32 to vector<1x64xf32>
    %132 = arith.select %130, %67, %81 : vector<1x64xi1>, vector<1x64xf32>
    %133 = arith.select %130, %68, %82 : vector<1x64xi1>, vector<1x64xf32>
    %134 = arith.select %130, %69, %83 : vector<1x64xi1>, vector<1x64xf32>
    %135 = arith.select %130, %70, %103 : vector<1x64xi1>, vector<1x64xf32>
    %136 = arith.select %130, %71, %104 : vector<1x64xi1>, vector<1x64xf32>
    %137 = arith.select %130, %72, %105 : vector<1x64xi1>, vector<1x64xf32>
    %138 = arith.select %130, %131, %108 : vector<1x64xi1>, vector<1x64xf32>
    %139 = arith.select %130, %131, %111 : vector<1x64xi1>, vector<1x64xf32>
    %140 = arith.select %130, %131, %114 : vector<1x64xi1>, vector<1x64xf32>
    %141 = tpu.concatenate %132, %133, %134, %135, %136, %137, %138, %139, %140 in 0 : vector<1x64xf32>, vector<1x64xf32>, vector<1x64xf32>, vector<1x64xf32>, vector<1x64xf32>, vector<1x64xf32>, vector<1x64xf32>, vector<1x64xf32>, vector<1x64xf32> -> vector<9x64xf32>
    %c0_30 = arith.constant 0 : index
    %c0_31 = arith.constant 0 : index
    %142 = vector.load %arg6[%c0_30, %c0_31] : memref<9x64xf32, #tpu.memory_space<vmem>>, vector<9x64xf32>
    tpu.vector_store %arg6[%c0_30, %c0_31], %141 {strides = array<i32>} : memref<9x64xf32, #tpu.memory_space<vmem>>, vector<9x64xf32>,
    return
  }
  func.func @transform_0(%arg0: i32) -> (i32, i32) {
    %c0_i32 = arith.constant 0 : i32
    %c0_i32_0 = arith.constant 0 : i32
    return %arg0, %c0_i32 : i32, i32
  }
  func.func @transform_1(%arg0: i32) -> (i32, i32) {
    %c0_i32 = arith.constant 0 : i32
    %c0_i32_0 = arith.constant 0 : i32
    %c0_i32_1 = arith.constant 0 : i32
    return %c0_i32, %c0_i32_0 : i32, i32
  }
  func.func @transform_2(%arg0: i32) -> (i32, i32) {
    %c0_i32 = arith.constant 0 : i32
    %c0_i32_0 = arith.constant 0 : i32
    %c0_i32_1 = arith.constant 0 : i32
    return %c0_i32, %c0_i32_0 : i32, i32
  }
  func.func @transform_3(%arg0: i32) -> (i32, i32) {
    %c0_i32 = arith.constant 0 : i32
    %c0_i32_0 = arith.constant 0 : i32
    %c0_i32_1 = arith.constant 0 : i32
    return %c0_i32, %c0_i32_0 : i32, i32
  }
  func.func @transform_4(%arg0: i32) -> (i32, i32) {
    %c0_i32 = arith.constant 0 : i32
    %c0_i32_0 = arith.constant 0 : i32
    %c0_i32_1 = arith.constant 0 : i32
    return %c0_i32, %c0_i32_0 : i32, i32
  }
  func.func @transform_5(%arg0: i32) -> (i32, i32) {
    %c0_i32 = arith.constant 0 : i32
    %c0_i32_0 = arith.constant 0 : i32
    return %c0_i32, %arg0 : i32, i32
  }
}

</mosaic_0001>

<bundles_post_ra>
// kernel: rotation_translation_forward.1
= control target key start
LH: loop header
LB: loop body
LE: loop exit
PB: predicated region body
PF: predicated region fallthrough
CT: control target
= control target key end

     0   :  { %vm49_vm0 = vcmask 72704   ;;  %v792_v3 = vmov 0   ;;  %v793_v4 = vmov 1   ;;  %v794_v15 = vmov 2   ;;  %s1008_s0 = inlined_call_operand.vmem [shape: f32[64,9], index: 0, kind: input, shape index: {}]   ;;  %s1009_s1 = inlined_call_operand.vmem [shape: f32[16,9], index: 1, kind: input, shape index: {}]   ;;  %s1010_s4 = inlined_call_operand.vmem [shape: f32[32,8], index: 4, kind: input, shape index: {}]   ;;  %s1011_s2 = inlined_call_operand.vmem [shape: f32[32,16], index: 2, kind: input, shape index: {}]   ;;  %s1012_s3 = inlined_call_operand.vmem [shape: f32[6,32], index: 3, kind: input, shape index: {}]   ;;  %s1013_s5 = inlined_call_operand.vmem [shape: f32[9,64], index: 5, kind: output, shape index: {}]  }
   0x1   :  { %v20_v0 = vld [vmem:[%s1008_s0] sm:$0xff]  ;;  %v21_v1 = vld [vmem:[%s1008_s0 + $0x8] sm:$0xff]  ;;  %vm840_vm1 = vmpackc.low %vm49_vm0, %vm49_vm0  ;;  %771 = vset.pattern.permute.xlu0 %v792_v3  ;;  %772 = vset.pattern.permute.xlu1 %v793_v4  ;;  %vm227_vm2 = vcmask 130048   ;;  %v795_v21 = vmov 3   ;;  %v796_v23 = vmov 4   ;;  %v797_v25 = vmov 5  }
   0x2   :  { %v727_v5 = vpack.c.bf16 %v21_v1, %v20_v0  ;;  %v22_v6 = vld [vmem:[%s1008_s0 + $0x10] sm:$0xff]  ;;  %v23_v7 = vld [vmem:[%s1008_s0 + $0x18] sm:$0xff]  ;;  %v28_v9 = vld [vmem:[%s1009_s1] sm:$0xff]  ;;  %vm155_vm3 = vcmask 523264   ;;  %vm799_vm4 = vmmov 0   ;;  %vm420_vm5 = vcmask 261120  }
   0x3   :  { %v733_v8 = vpack.c.bf16 %v23_v7, %v22_v6  ;;  %v858_v10 = vld [vmem:[%s1010_s4] sm:$0xff]  ;;  %703 = vmatprep.mubr.msk.f32.mxu0 %vm49_vm0, %v28_v9  ;;  %v25_v12 = vld [vmem:[%s1008_s0 + $0x28] sm:$0xff]  ;;  %v26_v16 = vld [vmem:[%s1008_s0 + $0x30] sm:$0xff]  ;;  %vm630_vm7 = vcmask 1040384   ;;  %vm632_vm8 = vcmask 1041408   ;;  %vm634_vm9 = vcmask 1042432  }
   0x4   :  { %729 = vmatprep.subr.msk.bf16.mxu0 %vm840_vm1, %v727_v5  ;;  %41 = vperm.xlu0 %771, %v858_v10   ;;  %v24_v11 = vld [vmem:[%s1008_s0 + $0x20] sm:$0xff]  ;;  %v36_v13 = vld [vmem:[%s1010_s4 + $0x8] sm:$0xff]  ;;  %v27_v17 = vld [vmem:[%s1008_s0 + $0x38] sm:$0xff]  ;;  %vm636_vm10 = vcmask 1043456   ;;  %vm645_vm11 = vcmask 516096   ;;  %vm638_vm12 = vcmask 1044480  }
   0x5   :  { %732 = vmatpush3.bf16.xpose.msk.msra.mxu0 %vm840_vm1, %v727_v5  ;;  %186 = vperm.xlu1 %772, %v858_v10   ;;  %v739_v14 = vpack.c.bf16 %v25_v12, %v24_v11  ;;  %v745_v18 = vpack.c.bf16 %v27_v17, %v26_v16  ;;  %v29_v19 = vld [vmem:[%s1009_s1 + $0x8] sm:$0xff]  ;;  %v30_v20 = vld [vmem:[%s1011_s2] sm:$0xff]  ;;  %v37_v22 = vld [vmem:[%s1010_s4 + $0x10] sm:$0xff]  ;;  %vm640_vm13 = vcmask 1045504   ;;  %vm642_vm14 = vcmask 1046528  }
   0x6   :  { %735 = vmatprep.subr.msk.bf16.mxu0 %vm840_vm1, %v733_v8  ;;  %710 = vmatprep.mubr.msk.f32.mxu1 %vm227_vm2, %v30_v20  ;;  %v38_v24 = vld [vmem:[%s1010_s4 + $0x18] sm:$0xff]  ;;  %v31_v9 = vld [vmem:[%s1011_s2 + $0x8] sm:$0xff]  ;;  %v32_v11 = vld [vmem:[%s1011_s2 + $0x10] sm:$0xff] }
   0x7   :  { %v33_v12 = vld [vmem:[%s1011_s2 + $0x18] sm:$0xff] }
   0x8   :  { %46 = vperm.xlu0 %771, %v36_v13  }
   0x9   :  { %190 = vperm.xlu1 %772, %v36_v13  }
   0xc   :  { %773 = vset.pattern.permute.xlu0 %v794_v15 }
   0xd   :  { %738 = vmatpush3.bf16.xpose.msk.msra.mxu0 %vm840_vm1, %v733_v8  ;;  %774 = vset.pattern.permute.xlu1 %v794_v15  ;;  %v801_v15 = vmov 6  }
   0xe   :  { %741 = vmatprep.subr.msk.bf16.mxu0 %vm840_vm1, %v739_v14  ;;  %196 = vperm.xlu0 %773, %v858_v10  }
   0xf   :  { %200 = vperm.xlu1 %774, %v36_v13  }
  0x12   :  { %776 = vset.pattern.permute.xlu0 %v795_v21 }
  0x13   :  { %775 = vset.pattern.permute.xlu1 %v795_v21  ;;  %214 = vperm.xlu0 %776, %v36_v13  }
  0x14   :  { %210 = vperm.xlu1 %775, %v858_v10  }
  0x15   :  { %744 = vmatpush3.bf16.xpose.msk.msra.mxu0 %vm840_vm1, %v739_v14  ;;  %v800_v14 = vmov 0.0  }
  0x16   :  { %747 = vmatprep.subr.msk.bf16.mxu0 %vm840_vm1, %v745_v18 }
  0x17   :  { %777 = vset.pattern.permute.xlu0 %v796_v23 }
  0x18   :  { %219 = vperm.xlu1 %775, %v37_v22   ;;  %369 = vperm.xlu0 %777, %v858_v10  }
  0x1c   :  { %224 = vperm.xlu1 %775, %v38_v24   ;;  %780 = vset.pattern.permute.xlu0 %v797_v25 }
  0x1d   :  { %750 = vmatpush3.bf16.xpose.msk.msra.mxu0 %vm840_vm1, %v745_v18  ;;  %393 = vperm.xlu0 %780, %v36_v13  }
  0x20   :  { %778 = vset.pattern.permute.xlu1 %v796_v23 }
  0x21   :  { %373 = vperm.xlu1 %778, %v36_v13   ;;  %397 = vperm.xlu0 %780, %v37_v22   ;;  %v798_v13 = vmov 0.0|0.0  }
  0x24   :  { %704 = vmatmul.mubr.msk.f32.vlgmr.msra.gmra.mrb[0].mxu0 %vm49_vm0, %v29_v19 }
  0x25   :  { %779 = vset.pattern.permute.xlu1 %v797_v25  ;;  %783 = vset.pattern.permute.xlu0 %v801_v15 }
  0x26   :  { %389 = vperm.xlu1 %779, %v858_v10   ;;  %417 = vperm.xlu0 %783, %v858_v10  }
  0x2a   :  { %781 = vset.pattern.permute.xlu1 %v796_v23 }
  0x2b   :  { %377 = vperm.xlu1 %781, %v37_v22  }
  0x2f   :  { %381 = vperm.xlu1 %781, %v38_v24  }
  0x33   :  { %782 = vset.pattern.permute.xlu1 %v797_v25 }
  0x34   :  { %401 = vperm.xlu1 %782, %v38_v24  }
  0x83   :  { %v42_v26 = vpop.permute.xlu0 %41 }
  0x84   :  { %v187_v57 = vpop.permute.xlu1 %186 }
  0x87   :  { %v47_v27 = vpop.permute.xlu0 %46 }
  0x88   :  { %v191_v58 = vpop.permute.xlu1 %190 }
  0x8d   :  { %v197_v63 = vpop.permute.xlu0 %196 }
  0x8e   :  { %v201_v62 = vpop.permute.xlu1 %200 }
  0x92   :  { %v215_v17 = vpop.permute.xlu0 %214 }
  0x93   :  { %v211_v16 = vpop.permute.xlu1 %210 }
  0x97   :  { %v220_v18 = vpop.permute.xlu1 %219 }
  0xf7   :  { %v705_v28 = vpop.f32.mrb[0].mxu0 }
  0xf8   :  { %v152_v29 = vadd.f32 %v705_v28, %v47_v27  ;;  %v146_v30 = vpop.f32.mrb[1].mxu0 }
  0xf9   :  { %v147_v31 = vadd.f32 %v146_v30, %v42_v26  ;;  %v225_v26 = vpop.permute.xlu1 %224 }
  0xfa   :  { %v157_v32 = vsel %vm155_vm3, %v152_v29, 0.0 }
  0xfb   :  { %v156_v33 = vsel %vm155_vm3, %v147_v31, 0.0 }
  0xfc   :  { %v158_v34 = vadd.f32 %v157_v32, %v156_v33 }
  0xfe   :  { %v159_v35 = vrot.slane %v158_v34, 4 }
 0x100   :  { %v160_v36 = vadd.f32 %v159_v35, %v158_v34 }
 0x102   :  { %v161_v37 = vrot.slane %v160_v36, 2 }
 0x104   :  { %v162_v38 = vadd.f32 %v161_v37, %v160_v36 }
 0x106   :  { %v163_v39 = vrot.slane %v162_v38, 1 }
 0x108   :  { %v164_v40 = vadd.f32 %v163_v39, %v162_v38 }
 0x10a   :  { %v166_v41 = vmul.f32 0.0625, %v164_v40 }
 0x10c   :  { %v167_v42 = vsub.f32 %v147_v31, %v166_v41  ;;  %v168_v43 = vsub.f32 %v152_v29, %v166_v41 }
 0x10e   :  { %v169_v44 = vmul.f32 %v167_v42, %v167_v42  ;;  %v170_v45 = vmul.f32 %v168_v43, %v168_v43 }
 0x110   :  { %v171_v46 = vsel %vm155_vm3, %v169_v44, 0.0  ;;  %v172_v47 = vsel %vm155_vm3, %v170_v45, 0.0 }
 0x111   :  { %v173_v48 = vadd.f32 %v172_v47, %v171_v46 }
 0x113   :  { %v174_v49 = vrot.slane %v173_v48, 4 }
 0x115   :  { %v175_v50 = vadd.f32 %v174_v49, %v173_v48 }
 0x117   :  { %v176_v51 = vrot.slane %v175_v50, 2 }
 0x119   :  { %v177_v52 = vadd.f32 %v176_v51, %v175_v50 }
 0x11b   :  { %v178_v53 = vrot.slane %v177_v52, 1 }
 0x11d   :  { %v179_v54 = vadd.f32 %v178_v53, %v177_v52 }
 0x11f   :  { %v180_v55 = vmul.f32 0.0625, %v179_v54 }
 0x121   :  { %v181_v56 = vadd.f32 1e-05, %v180_v55 }
 0x123   :  { %784 = vrsqrt.f32 %v181_v56 }
 0x12d   :  { %v785_v59 = vpop.eup %784 }
 0x12e   :  { %v183_v60 = vmul.f32 %v785_v59, %v167_v42  ;;  %v184_v61 = vmul.f32 %v785_v59, %v168_v43 }
 0x130   :  { %v193_v0 = vmul.f32 %v187_v57, %v183_v60  ;;  %v194_v1 = vmul.f32 %v191_v58, %v184_v61  ;;  %v374_v58 = vpop.permute.xlu1 %373 }
 0x132   :  { %v204_v2 = vadd.f32 %v201_v62, %v194_v1  ;;  %v203_v3 = vadd.f32 %v197_v63, %v193_v0 }
 0x134   :  { %v206_v4 = vmul.f32 0.1, %v204_v2  ;;  %v205_v5 = vmul.f32 0.1, %v203_v3  ;;  %v390_v63 = vpop.permute.xlu1 %389 }
 0x136   :  { %v208_v6 = vmax.f32 %v204_v2, %v206_v4  ;;  %v207_v7 = vmax.f32 %v203_v3, %v205_v5  ;;  %v370_v3 = vpop.permute.xlu0 %369 }
 0x138   :  { %v751_v8 = vpack.c.bf16 %v208_v6, %v207_v7  ;;  %v378_v2 = vpop.permute.xlu1 %377 }
 0x13a   :  { %752 = vmatprep.subr.bf16.mxu1 %v751_v8  ;;  %v394_v5 = vpop.permute.xlu0 %393 }
 0x13b   :  { %754 = vmatpush3.bf16.msra.mxu1 %v751_v8 }
 0x13c   :  { %755 = vmatprep.subr.bf16.mxu1 %v798_v13  ;;  %v382_v4 = vpop.permute.xlu1 %381 }
 0x13e   :  { %711 = vmatmul.mubr.msk.f32.vlgmr.msra.gmra.mrb[0].mxu1 %vm227_vm2, %v31_v9 }
 0x13f   :  { %713 = vmatprep.mubr.msk.f32.mxu1 %vm227_vm2, %v32_v11 }
 0x142   :  { %714 = vmatmul.mubr.msk.f32.gmra.mrb[2].mxu1 %vm227_vm2, %v33_v12  ;;  %v402_v12 = vpop.permute.xlu1 %401 }
 0x143   :  { %724 = vmatprep.mubr.msk.f32.mxu1 %vm799_vm4, %v800_v14  ;;  %v398_v14 = vpop.permute.xlu0 %397 }
 0x211   :  { %v712_v19 = vpop.f32.mrb[0].mxu1 }
 0x212   :  { %v312_v20 = vadd.f32 %v712_v19, %v215_v17  ;;  %v306_v21 = vpop.f32.mrb[1].mxu1 }
 0x213   :  { %v307_v22 = vadd.f32 %v306_v21, %v211_v16 }
 0x214   :  { %v326_v23 = vsel %vm155_vm3, %v312_v20, 0.0 }
 0x215   :  { %v325_v24 = vsel %vm155_vm3, %v307_v22, 0.0  ;;  %v715_v25 = vpop.f32.mrb[2].mxu1 }
 0x216   :  { %v327_v27 = vadd.f32 %v326_v23, %v325_v24  ;;  %v316_v28 = vpop.f32.mrb[3].mxu1  ;;  %v322_v29 = vadd.f32 %v715_v25, %v225_v26 }
 0x217   :  { %v317_v30 = vadd.f32 %v316_v28, %v220_v18 }
 0x218   :  { %v330_v32 = vsel %vm155_vm3, %v322_v29, 0.0 }
 0x219   :  { %v328_v31 = vsel %vm155_vm3, %v317_v30, 0.0 }
 0x21a   :  { %v329_v10 = vadd.f32 %v328_v31, %v327_v27 }
 0x21c   :  { %v331_v33 = vadd.f32 %v330_v32, %v329_v10  ;;  %v34_v32 = vld [vmem:[%s1012_s3] sm:$0x3f] }
 0x21e   :  { %v332_v34 = vrot.slane %v331_v33, 4 }
 0x220   :  { %v333_v35 = vadd.f32 %v332_v34, %v331_v33  ;;  %v418_v33 = vpop.permute.xlu0 %417 }
 0x222   :  { %v334_v36 = vrot.slane %v333_v35, 2 }
 0x224   :  { %v335_v37 = vadd.f32 %v334_v36, %v333_v35 }
 0x226   :  { %v336_v38 = vrot.slane %v335_v37, 1 }
 0x228   :  { %v337_v39 = vadd.f32 %v336_v38, %v335_v37 }
 0x22a   :  { %v339_v40 = vmul.f32 0.03125, %v337_v39 }
 0x22c   :  { %v342_v41 = vsub.f32 %v317_v30, %v339_v40  ;;  %v343_v42 = vsub.f32 %v322_v29, %v339_v40  ;;  %v340_v43 = vsub.f32 %v307_v22, %v339_v40  ;;  %v341_v44 = vsub.f32 %v312_v20, %v339_v40 }
 0x22e   :  { %v346_v45 = vmul.f32 %v342_v41, %v342_v41  ;;  %v344_v46 = vmul.f32 %v340_v43, %v340_v43  ;;  %v345_v47 = vmul.f32 %v341_v44, %v341_v44  ;;  %v347_v48 = vmul.f32 %v343_v42, %v343_v42 }
 0x230   :  { %v348_v49 = vsel %vm155_vm3, %v344_v46, 0.0  ;;  %v349_v50 = vsel %vm155_vm3, %v345_v47, 0.0  ;;  %v351_v52 = vsel %vm155_vm3, %v346_v45, 0.0  ;;  %v353_v54 = vsel %vm155_vm3, %v347_v48, 0.0 }
 0x231   :  { %v350_v51 = vadd.f32 %v349_v50, %v348_v49  ;;  %v602_v45 = vlaneseq }
 0x233   :  { %v352_v53 = vadd.f32 %v351_v52, %v350_v51 }
 0x235   :  { %v354_v55 = vadd.f32 %v353_v54, %v352_v53  ;;  %v603_v54 = vand.u32 127, %v602_v45 }
 0x237   :  { %v355_v56 = vrot.slane %v354_v55, 4 }
 0x239   :  { %v356_v57 = vadd.f32 %v355_v56, %v354_v55 }
 0x23b   :  { %v357_v59 = vrot.slane %v356_v57, 2 }
 0x23d   :  { %v358_v60 = vadd.f32 %v357_v59, %v356_v57 }
 0x23f   :  { %v359_v61 = vrot.slane %v358_v60, 1 }
 0x241   :  { %v360_v62 = vadd.f32 %v359_v61, %v358_v60  ;;  %v606_v60 = vcvt.s32.f32 %v603_v54 }
 0x243   :  { %v361_v0 = vmul.f32 0.03125, %v360_v62 }
 0x245   :  { %v362_v1 = vadd.f32 1e-05, %v361_v0 }
 0x247   :  { %786 = vrsqrt.f32 %v362_v1 }
 0x251   :  { %v787_v6 = vpop.eup %786 }
 0x252   :  { %v365_v7 = vmul.f32 %v787_v6, %v341_v44  ;;  %v366_v8 = vmul.f32 %v787_v6, %v342_v41  ;;  %v364_v9 = vmul.f32 %v787_v6, %v340_v43  ;;  %v367_v11 = vmul.f32 %v787_v6, %v343_v42 }
 0x254   :  { %v385_v15 = vmul.f32 %v374_v58, %v365_v7  ;;  %v386_v16 = vmul.f32 %v378_v2, %v366_v8  ;;  %v384_v17 = vmul.f32 %v370_v3, %v364_v9  ;;  %v387_v18 = vmul.f32 %v382_v4, %v367_v11 }
 0x255   :  { %v608_v3 = vmul.f32 0.25, %v606_v60 }
 0x256   :  { %v404_v19 = vadd.f32 %v390_v63, %v384_v17  ;;  %v405_v20 = vadd.f32 %v394_v5, %v385_v15  ;;  %v407_v21 = vadd.f32 %v402_v12, %v387_v18  ;;  %v406_v22 = vadd.f32 %v398_v14, %v386_v16 }
 0x257   :  { %v609_v9 = vadd.f32 0.5, %v608_v3 }
 0x258   :  { %v408_v23 = vmul.f32 0.1, %v404_v19  ;;  %v409_v24 = vmul.f32 0.1, %v405_v20  ;;  %v411_v25 = vmul.f32 0.1, %v407_v21 }
 0x259   :  { %v410_v26 = vmul.f32 0.1, %v406_v22  ;;  %v610_v16 = vfloor.f32 %v609_v9 }
 0x25a   :  { %v412_v27 = vmax.f32 %v404_v19, %v408_v23  ;;  %v413_v28 = vmax.f32 %v405_v20, %v409_v24  ;;  %v415_v29 = vmax.f32 %v407_v21, %v411_v25 }
 0x25b   :  { %v414_v30 = vmax.f32 %v406_v22, %v410_v26  ;;  %v611_v19 = vmul.f32 4.0, %v610_v16 }
 0x25c   :  { %v756_v31 = vpack.c.bf16 %v413_v28, %v412_v27 }
 0x25d   :  { %v759_v10 = vpack.c.bf16 %v415_v29, %v414_v30  ;;  %v612_v20 = vsub.f32 %v606_v60, %v611_v19 }
 0x25e   :  { %757 = vmatpush3.bf16.msra.mxu1 %v756_v31 }
 0x25f   :  { %758 = vmatprep.subr.bf16.mxu1 %v798_v13  ;;  %v613_v21 = vand.u32 2147483647, %v612_v20 }
 0x261   :  { %vm963_vm6 = vcmp.lt.f32.partialorder %v613_v21, 0.5 }
 0x262   :  { %760 = vmatpush3.bf16.msra.mxu1 %v759_v10 }
 0x265   :  { %725 = vmatmul.mubr.msk.f32.vlgmr.msra.gmra.mrb[4].mxu1 %vm420_vm5, %v34_v32 }
 0x338   :  { %v490_v34 = vpop.f32.mrb[4].mxu1 }
 0x339   :  { %v940_v35 = vadd.f32 %v490_v34, %v418_v33  ;;  %v726_v36 = vpop.f32.mrb[5].mxu1 }
 0x33b   :  { %v494_v37 = vmul.f32 %v940_v35, %v940_v35  ;;  %v513_v49 = vrot.slane %v940_v35, 3 }
 0x33d   :  { %v496_v38 = vrot.slane %v494_v37, 1  ;;  %v499_v40 = vrot.slane %v494_v37, 2 }
 0x33f   :  { %v498_v39 = vadd.f32 %v496_v38, %v494_v37 }
 0x341   :  { %v501_v41 = vadd.f32 %v499_v40, %v498_v39 }
 0x343   :  { %v502_v13 = vmax.f32 %v501_v41, 1e-24 }
 0x345   :  { %788 = vrsqrt.f32 %v502_v13 }
 0x34f   :  { %v789_v42 = vpop.eup %788 }
 0x350   :  { %v506_v43 = vrot.slane %v789_v42, 7  ;;  %v509_v44 = vrot.slane %v789_v42, 6  ;;  %v945_v46 = vmul.f32 %v789_v42, %v940_v35 }
 0x352   :  { %v948_v47 = vmul.f32 %v506_v43, %v940_v35  ;;  %v951_v48 = vmul.f32 %v509_v44, %v940_v35  ;;  %v515_v52 = vmul.f32 %v513_v49, %v945_v46  ;;  %v615_v31 = vsel %vm963_vm6, %v940_v35, %v945_v46 }
 0x354   :  { %v516_v50 = vmul.f32 %v513_v49, %v948_v47  ;;  %v521_v51 = vmul.f32 %v513_v49, %v951_v48  ;;  %v532_v58 = vrot.slane %v948_v47, 1  ;;  %v540_v59 = vrot.slane %v951_v48, 2 }
 0x355   :  { %v616_v27 = vsel %vm963_vm6, %v940_v35, %v948_v47  ;;  %v617_v32 = vsel %vm963_vm6, %v940_v35, %v951_v48 }
 0x356   :  { %v518_v53 = vrot.slane %v516_v50, 1  ;;  %v523_v56 = vrot.slane %v521_v51, 2  ;;  %v631_v33 = vsel %vm630_vm7, %v615_v31, %v616_v27 }
 0x357   :  { %v633_v42 = vsel %vm632_vm8, %v631_v33, %v617_v32 }
 0x358   :  { %v520_v55 = vadd.f32 %v518_v53, %v515_v52 }
 0x35a   :  { %v525_v57 = vadd.f32 %v523_v56, %v520_v55 }
 0x35c   :  { %v526_v61 = vmul.f32 %v525_v57, %v945_v46  ;;  %v534_v62 = vmul.f32 %v532_v58, %v525_v57  ;;  %v542_v63 = vmul.f32 %v540_v59, %v525_v57 }
 0x35e   :  { %v528_v0 = vrot.slane %v526_v61, 5  ;;  %v536_v1 = vrot.slane %v534_v62, 4  ;;  %v544_v2 = vrot.slane %v542_v63, 3 }
 0x360   :  { %v530_v4 = vsub.f32 %v940_v35, %v528_v0  ;;  %v538_v5 = vsub.f32 %v940_v35, %v536_v1  ;;  %v546_v6 = vsub.f32 %v940_v35, %v544_v2 }
 0x362   :  { %v548_v7 = vmul.f32 %v538_v5, %v538_v5  ;;  %v553_v8 = vmul.f32 %v546_v6, %v546_v6  ;;  %v547_v11 = vmul.f32 %v530_v4, %v530_v4 }
 0x364   :  { %v550_v12 = vrot.slane %v548_v7, 1  ;;  %v555_v15 = vrot.slane %v553_v8, 2 }
 0x366   :  { %v552_v14 = vadd.f32 %v550_v12, %v547_v11 }
 0x368   :  { %v557_v17 = vadd.f32 %v555_v15, %v552_v14 }
 0x36a   :  { %v558_v18 = vmax.f32 %v557_v17, 1e-24 }
 0x36c   :  { %790 = vrsqrt.f32 %v558_v18 }
 0x376   :  { %v791_v22 = vpop.eup %790 }
 0x377   :  { %v560_v24 = vmul.f32 %v791_v22, %v530_v4  ;;  %v562_v25 = vrot.slane %v791_v22, 7  ;;  %v565_v26 = vrot.slane %v791_v22, 6 }
 0x379   :  { %v564_v28 = vmul.f32 %v562_v25, %v538_v5  ;;  %v567_v29 = vmul.f32 %v565_v26, %v546_v6  ;;  %v594_v30 = vrot.slane %v560_v24, 2  ;;  %v581_v10 = vrot.slane %v560_v24, 1 }
 0x37a   :  { %v618_v40 = vsel %vm963_vm6, %v940_v35, %v560_v24 }
 0x37b   :  { %v569_v34 = vrot.slane %v567_v29, 4  ;;  %v573_v36 = vrot.slane %v564_v28, 2  ;;  %v584_v37 = vrot.slane %v567_v29, 5  ;;  %v591_v38 = vrot.slane %v564_v28, 4 }
 0x37c   :  { %v596_v39 = vmul.f32 %v594_v30, %v948_v47  ;;  %v583_v43 = vmul.f32 %v581_v10, %v951_v48  ;;  %v619_v49 = vsel %vm963_vm6, %v940_v35, %v564_v28  ;;  %v635_v53 = vsel %vm634_vm9, %v633_v42, %v618_v40 }
 0x37d   :  { %v575_v41 = vmul.f32 %v573_v36, %v951_v48  ;;  %v586_v13 = vmul.f32 %v584_v37, %v945_v46  ;;  %v593_v44 = vmul.f32 %v591_v38, %v945_v46  ;;  %v571_v50 = vmul.f32 %v569_v34, %v948_v47 }
 0x37e   :  { %v598_v45 = vrot.slane %v596_v39, 1  ;;  %v620_v48 = vsel %vm963_vm6, %v940_v35, %v567_v29  ;;  %v637_v57 = vsel %vm636_vm10, %v635_v53, %v619_v49 }
 0x37f   :  { %v577_v51 = vrot.slane %v575_v41, 1  ;;  %v588_v52 = vrot.slane %v586_v13, 6  ;;  %v639_v35 = vsel %vm638_vm12, %v637_v57, %v620_v48 }
 0x380   :  { %v600_v54 = vsub.f32 %v593_v44, %v598_v45 }
 0x381   :  { %v579_v55 = vsub.f32 %v571_v50, %v577_v51  ;;  %v590_v56 = vsub.f32 %v583_v43, %v588_v52 }
 0x382   :  { %v623_v46 = vsel %vm963_vm6, 0.0, %v600_v54 }
 0x383   :  { %v621_v47 = vsel %vm963_vm6, 0.0, %v579_v55  ;;  %v622_v58 = vsel %vm963_vm6, 0.0, %v590_v56  ;;  %646 = vst.msk [vmem:[%s1013_s5 + $0x8] sm:$0x1] %vm645_vm11, %v623_v46 }
 0x384   :  { %v625_v59 = vrot.slane %v621_v47, 3  ;;  %v628_v60 = vrot.slane %v622_v58, 3 }
 0x386   :  { %v641_v61 = vsel %vm640_vm13, %v639_v35, %v625_v59 }
 0x387   :  { %v643_v62 = vsel %vm642_vm14, %v641_v61, %v628_v60 }
 0x388   :  { %644 = vst.msk [vmem:[%s1013_s5] sm:$0xff] %vm155_vm3, %v643_v62 }

</bundles_post_ra>
